<compile_context>
chip_gen: v6e
topology: v6e:2x2x1
jax: 0.10.0
libtpu: 0.0.40
codegen_flags: <defaults>
</compile_context>

<pallas_src>
import functools

import jax
import jax.numpy as jnp
from jax.experimental import pallas as pl
from jax.experimental.pallas import tpu as pltpu

_EPS = 1e-5


def _layernorm(h, gamma, beta, eps=_EPS):
    mu = jnp.mean(h, axis=-1, keepdims=True)
    var = jnp.mean((h - mu) ** 2, axis=-1, keepdims=True)
    return (h - mu) * jax.lax.rsqrt(var + eps) * gamma + beta


# --------------------------------------------------------------------------------------
# Call 1: skip_linear + LayerNorm1 + QKV projection, tiled over (B, L)
# --------------------------------------------------------------------------------------
def _precompute_kernel(num_heads,
                       x_ref, skip_ref,
                       wskip_ref, bskip_ref, g1_ref, b1_ref, wqkv_ref,
                       xs_ref, q_ref, k_ref, v_ref):
    C = x_ref.shape[-1]
    H = num_heads
    D = C // H
    scale = D ** -0.5
    bf16 = jnp.bfloat16
    f32 = jnp.float32

    x = x_ref[0]                      # (tp, C) bf16
    sk = skip_ref[0]                  # (tp, C) bf16
    # cat([x, skip], -1) @ W  ==  x @ W_top + skip @ W_bot
    w_top = wskip_ref[0:C, :]
    w_bot = wskip_ref[C:2 * C, :]
    xs = (jnp.dot(x, w_top, preferred_element_type=f32)
          + jnp.dot(sk, w_bot, preferred_element_type=f32)
          + bskip_ref[0])             # (tp, C) f32 residual stream
    xs_ref[0] = xs

    h = _layernorm(xs, g1_ref[0], b1_ref[0]).astype(bf16)
    qkv = jnp.dot(h, wqkv_ref[...], preferred_element_type=f32)  # (tp, 3C); qkv_bias=False
    # qkv last-dim ordering is (K, H, D): split once into head-major outputs.
    # Fold the 1/sqrt(D) attention scale into Q here (saves H*tl*L VALU muls later).
    for hh in range(H):
        q_ref[0, hh] = (qkv[:, 0 * C + hh * D:0 * C + (hh + 1) * D] * scale).astype(bf16)
        k_ref[0, hh] = qkv[:, 1 * C + hh * D:1 * C + (hh + 1) * D].astype(bf16)
        v_ref[0, hh] = qkv[:, 2 * C + hh * D:2 * C + (hh + 1) * D].astype(bf16)


# --------------------------------------------------------------------------------------
# Call 2: attention (head-grouped) + out-proj + residual + LayerNorm2 + MLP + residual
# --------------------------------------------------------------------------------------
def _attn_mlp_kernel(num_heads, head_group, n_hm_chunks,
                     xs_ref, q_ref, k_ref, v_ref,
                     wproj3_ref, bproj_ref,
                     g2_ref, b2_ref,
                     wfc1_ref, bfc1_ref, wfc2_ref, bfc2_ref,
                     o_ref):
    H = num_heads
    HG = head_group
    tl = q_ref.shape[2]
    C = xs_ref.shape[-1]
    bf16 = jnp.bfloat16
    f32 = jnp.float32

    q = q_ref[0]        # (H, tl, D) bf16, pre-scaled by D**-0.5
    k = k_ref[0]        # (H, L, D)  bf16
    v = v_ref[0]        # (H, L, D)  bf16

    # ---- attention + output projection, accumulated per head group ----
    attn_out = jnp.zeros((tl, C), f32)
    for g in range(H // HG):
        h0 = g * HG
        qg = q[h0:h0 + HG]
        kg = k[h0:h0 + HG]
        vg = v[h0:h0 + HG]
        s = jnp.einsum('hqd,hkd->hqk', qg, kg, preferred_element_type=f32)   # (HG, tl, L)
        m = jnp.max(s, axis=-1, keepdims=True)
        p = jnp.exp(s - m)
        p = p * pl.reciprocal(jnp.sum(p, axis=-1, keepdims=True), approx=True)
        att = jnp.einsum('hqk,hkd->hqd', p.astype(bf16), vg,
                         preferred_element_type=f32)                         # (HG, tl, D)
        # Head-batched projection against w_proj reshaped (H, D, C) -- no concat/relayout.
        attn_out = attn_out + jnp.einsum('hqd,hdc->hqc', att.astype(bf16),
                                         wproj3_ref[h0:h0 + HG],
                                         preferred_element_type=f32).sum(axis=0)

    x_t = xs_ref[0] + attn_out + bproj_ref[0]          # (tl, C) f32 residual

    # ---- MLP branch, fori_loop over hidden-dim chunks (bounded live ranges) ----
    h2 = _layernorm(x_t, g2_ref[0], b2_ref[0]).astype(bf16)

    def mlp_chunk(c, acc):
        mc = jnp.dot(h2, wfc1_ref[c], preferred_element_type=f32) + bfc1_ref[c]
        # TODO(synk): nn.GELU() defaults to exact erf; tanh approximation used here since
        # erf lowering on Mosaic is not guaranteed (max abs deviation ~1e-3).
        mc = jax.nn.gelu(mc, approximate=True).astype(bf16)
        return acc + jnp.dot(mc, wfc2_ref[c], preferred_element_type=f32)

    mlp = jax.lax.fori_loop(0, n_hm_chunks, mlp_chunk, jnp.zeros((tl, C), f32))
    o_ref[0] = (x_t + mlp + bfc2_ref[0]).astype(o_ref.dtype)


# --------------------------------------------------------------------------------------
# Wrapper
# --------------------------------------------------------------------------------------
def uvit_block(x, skip, params, num_heads, *, tl=None, tp=None, head_group=None,
               hm_chunk=512):
    B, L, C = x.shape
    H = num_heads
    D = C // H
    HM = params["w_fc1"].shape[1]

    # Tile sizes (must divide L).
    if tp is None:
        tp = min(L, 256)
        while L % tp:
            tp -= 1
    assert L % tp == 0, "precompute tile must divide L"
    if tl is None:
        tl = min(L, 128)
        while L % tl:
            tl -= 1
    assert L % tl == 0, "q-tile size must divide L"
    if head_group is None:
        head_group = min(H, 8)
    while H % head_group:
        head_group -= 1
    hm_chunk = max(1, min(hm_chunk, HM))
    if HM % hm_chunk:
        hm_chunk = HM
    n_hm = HM // hm_chunk

    bf16 = jnp.bfloat16
    f32 = jnp.float32

    # Per-generation VMEM budget: 128-MiB parts (v5e/v6e) -> 96 MiB; otherwise (v7x 64 MiB,
    # unknown) stay at the conservative 48 MiB.
    dk = ""
    try:
        dk = jax.devices()[0].device_kind.lower()
    except Exception:
        pass
    vmem_limit = (96 if ("v5" in dk or "v6" in dk) else 48) * 1024 * 1024

    xb = x.astype(bf16)
    skb = skip.astype(bf16)
    w_vmem = pl.BlockSpec(memory_space=pltpu.MemorySpace.VMEM)   # whole weight, single copy

    # ---------------- call 1: skip_linear + LN1 + QKV ----------------
    pre_weights = [params["w_skip"].astype(bf16), params["b_skip"].astype(f32),
                   params["g1"].astype(f32), params["b1"].astype(f32),
                   params["w_qkv"].astype(bf16)]
    row_in = pl.BlockSpec((1, tp, C), lambda b, l: (b, l, 0))
    xs_out = pl.BlockSpec((1, tp, C), lambda b, l: (b, l, 0))
    head_out = pl.BlockSpec((1, H, tp, D), lambda b, l: (b, 0, l, 0))

    xs, q, k, v = pl.pallas_call(
        functools.partial(_precompute_kernel, H),
        out_shape=(jax.ShapeDtypeStruct((B, L, C), f32),
                   jax.ShapeDtypeStruct((B, H, L, D), bf16),
                   jax.ShapeDtypeStruct((B, H, L, D), bf16),
                   jax.ShapeDtypeStruct((B, H, L, D), bf16)),
        grid_spec=pltpu.PrefetchScalarGridSpec(
            num_scalar_prefetch=0,
            grid=(B, L // tp),
            in_specs=[row_in, row_in] + [w_vmem] * len(pre_weights),
            out_specs=[xs_out, head_out, head_out, head_out],
        ),
        compiler_params=pltpu.CompilerParams(
            dimension_semantics=("parallel", "parallel"),
            vmem_limit_bytes=vmem_limit),
    )(xb, skb, *pre_weights)

    # ---------------- call 2: attention + proj + LN2 + MLP ----------------
    attn_weights = [
        params["w_proj"].astype(bf16).reshape(H, D, C),                         # head-major
        params["b_proj"].astype(f32),
        params["g2"].astype(f32), params["b2"].astype(f32),
        params["w_fc1"].astype(bf16).reshape(C, n_hm, hm_chunk).transpose(1, 0, 2),
        params["b_fc1"].astype(f32).reshape(n_hm, 1, hm_chunk),
        params["w_fc2"].astype(bf16).reshape(n_hm, hm_chunk, C),
        params["b_fc2"].astype(f32),
    ]
    xs_spec = pl.BlockSpec((1, tl, C), lambda b, l: (b, l, 0))
    q_spec = pl.BlockSpec((1, H, tl, D), lambda b, l: (b, 0, l, 0))
    kv_spec = pl.BlockSpec((1, H, L, D), lambda b, l: (b, 0, 0, 0))   # resident per batch row
    out_spec = pl.BlockSpec((1, tl, C), lambda b, l: (b, l, 0))

    return pl.pallas_call(
        functools.partial(_attn_mlp_kernel, H, head_group, n_hm),
        out_shape=jax.ShapeDtypeStruct((B, L, C), x.dtype),
        grid_spec=pltpu.PrefetchScalarGridSpec(
            num_scalar_prefetch=0,
            grid=(B, L // tl),
            in_specs=[xs_spec, q_spec, kv_spec, kv_spec] + [w_vmem] * len(attn_weights),
            out_specs=out_spec,
        ),
        compiler_params=pltpu.CompilerParams(
            dimension_semantics=("parallel", "parallel"),
            vmem_limit_bytes=vmem_limit),
    )(xs, q, k, v, *attn_weights)


# --------------------------------------------------------------------------------------
# Plain-JAX f32 reference of Block._forward (math attention mode, skip=True)
# --------------------------------------------------------------------------------------
def reference(x, skip, p, num_heads):
    B, L, C = x.shape
    D = C // num_heads

    def ln(h, g, b):
        mu = h.mean(-1, keepdims=True)
        var = ((h - mu) ** 2).mean(-1, keepdims=True)
        return (h - mu) / jnp.sqrt(var + 1e-5) * g[0] + b[0]

    x = jnp.concatenate([x, skip], -1) @ p["w_skip"] + p["b_skip"][0]
    h = ln(x, p["g1"], p["b1"])
    qkv = (h @ p["w_qkv"]).reshape(B, L, 3, num_heads, D).transpose(2, 0, 3, 1, 4)
    q, k, v = qkv[0], qkv[1], qkv[2]
    s = jnp.einsum('bhqd,bhkd->bhqk', q, k) * D ** -0.5
    a = jax.nn.softmax(s, -1)
    o = jnp.einsum('bhqk,bhkd->bhqd', a, v).transpose(0, 2, 1, 3).reshape(B, L, C)
    x = x + o @ p["w_proj"] + p["b_proj"][0]
    h2 = ln(x, p["g2"], p["b2"])
    m = jax.nn.gelu(h2 @ p["w_fc1"] + p["b_fc1"][0], approximate=True)
    return x + m @ p["w_fc2"] + p["b_fc2"][0]


if __name__ == "__main__":
    B, L, C, H = 2, 16, 32, 4          # batch, seq, dim, num_heads (head_dim=8)
    HM = int(C * 4.0)                  # mlp_hidden_dim

    key = jax.random.PRNGKey(0)
    ks = jax.random.split(key, 12)

    def w(k, shape, scale=0.02):
        return scale * jax.random.normal(k, shape, jnp.float32)

    # Weights stored (in_features, out_features), i.e. torch Linear weight transposed.
    params = {
        "w_skip": w(ks[0], (2 * C, C)), "b_skip": w(ks[1], (1, C)),
        "g1": jnp.ones((1, C), jnp.float32), "b1": jnp.zeros((1, C), jnp.float32),
        "w_qkv": w(ks[2], (C, 3 * C)),                       # qkv_bias=False (module default)
        "w_proj": w(ks[3], (C, C)), "b_proj": w(ks[4], (1, C)),
        "g2": jnp.ones((1, C), jnp.float32), "b2": jnp.zeros((1, C), jnp.float32),
        "w_fc1": w(ks[5], (C, HM)), "b_fc1": w(ks[6], (1, HM)),
        "w_fc2": w(ks[7], (HM, C)), "b_fc2": w(ks[8], (1, C)),
    }

    x = jax.random.normal(ks[9], (B, L, C), jnp.float32)
    skip = jax.random.normal(ks[10], (B, L, C), jnp.float32)

    # tl=8 exercises the multi-q-tile path (grid = (2, 2) in the attention call).
    out = uvit_block(x, skip, params, num_heads=H, tl=8)
    out = jax.block_until_ready(out)

    ref = reference(x, skip, params, H)
    err = float(jnp.max(jnp.abs(out - ref)))
    assert err < 2e-2, f"mismatch vs f32 reference (bf16 matmuls): {err}"
    print("KERNEL_OK")
</pallas_src>

<mosaic_0001>
module attributes {stable_mosaic.version = 11 : i64} {
  func.func @_precompute_kernel(%arg0: i32, %arg1: i32, %arg2: memref<1x16x32xbf16, #tpu.memory_space<vmem>>, %arg3: memref<1x16x32xbf16, #tpu.memory_space<vmem>>, %arg4: memref<64x32xbf16, #tpu.memory_space<vmem>>, %arg5: memref<1x32xf32, #tpu.memory_space<vmem>>, %arg6: memref<1x32xf32, #tpu.memory_space<vmem>>, %arg7: memref<1x32xf32, #tpu.memory_space<vmem>>, %arg8: memref<32x96xbf16, #tpu.memory_space<vmem>>, %arg9: memref<1x16x32xf32, #tpu.memory_space<vmem>>, %arg10: memref<1x4x16x8xbf16, #tpu.memory_space<vmem>>, %arg11: memref<1x4x16x8xbf16, #tpu.memory_space<vmem>>, %arg12: memref<1x4x16x8xbf16, #tpu.memory_space<vmem>>) attributes {dimension_semantics = [#tpu.dimension_semantics<parallel>, #tpu.dimension_semantics<parallel>], iteration_bounds = array<i64: 2, 1>, scalar_prefetch = 0 : i64, scratch_operands = 0 : i64, tpu.core_type = #tpu.core_type<tc>, window_params = [{transform_indices = @transform_0, window_bounds = array<i64: 1, 16, 32>}, {transform_indices = @transform_1, window_bounds = array<i64: 1, 16, 32>}, {pipeline_mode = #tpu.pipeline_mode<synchronous>, transform_indices = @transform_2, window_bounds = array<i64: 64, 32>}, {pipeline_mode = #tpu.pipeline_mode<synchronous>, transform_indices = @transform_3, window_bounds = array<i64: 1, 32>}, {pipeline_mode = #tpu.pipeline_mode<synchronous>, transform_indices = @transform_4, window_bounds = array<i64: 1, 32>}, {pipeline_mode = #tpu.pipeline_mode<synchronous>, transform_indices = @transform_5, window_bounds = array<i64: 1, 32>}, {pipeline_mode = #tpu.pipeline_mode<synchronous>, transform_indices = @transform_6, window_bounds = array<i64: 32, 96>}, {transform_indices = @transform_7, window_bounds = array<i64: 1, 16, 32>}, {transform_indices = @transform_8, window_bounds = array<i64: 1, 4, 16, 8>}, {transform_indices = @transform_9, window_bounds = array<i64: 1, 4, 16, 8>}, {transform_indices = @transform_10, window_bounds = array<i64: 1, 4, 16, 8>}]} {
    %c0 = arith.constant 0 : index
    %c0_0 = arith.constant 0 : index
    %c0_1 = arith.constant 0 : index
    %0 = vector.load %arg2[%c0, %c0_0, %c0_1] : memref<1x16x32xbf16, #tpu.memory_space<vmem>>, vector<1x16x32xbf16>
    %1 = vector.shape_cast %0 : vector<1x16x32xbf16> to vector<16x32xbf16>
    %c0_2 = arith.constant 0 : index
    %c0_3 = arith.constant 0 : index
    %c0_4 = arith.constant 0 : index
    %2 = vector.load %arg3[%c0_2, %c0_3, %c0_4] : memref<1x16x32xbf16, #tpu.memory_space<vmem>>, vector<1x16x32xbf16>
    %3 = vector.shape_cast %2 : vector<1x16x32xbf16> to vector<16x32xbf16>
    %c0_5 = arith.constant 0 : index
    %c0_6 = arith.constant 0 : index
    %4 = vector.load %arg4[%c0_5, %c0_6] : memref<64x32xbf16, #tpu.memory_space<vmem>>, vector<32x32xbf16>
    %c32 = arith.constant 32 : index
    %c0_7 = arith.constant 0 : index
    %5 = vector.load %arg4[%c32, %c0_7] : memref<64x32xbf16, #tpu.memory_space<vmem>>, vector<32x32xbf16>
    %cst = arith.constant dense<0.000000e+00> : vector<16x32xf32>
    %6 = tpu.matmul %1, %4, %cst {dimension_numbers = #tpu.dot_dimension_numbers<[1], [0], [0], [1], [0, 0, 1, 1], [], []>} : vector<16x32xbf16>, vector<32x32xbf16>, vector<16x32xf32> -> vector<16x32xf32>
    %cst_8 = arith.constant dense<0.000000e+00> : vector<16x32xf32>
    %7 = tpu.matmul %3, %5, %cst_8 {dimension_numbers = #tpu.dot_dimension_numbers<[1], [0], [0], [1], [0, 0, 1, 1], [], []>} : vector<16x32xbf16>, vector<32x32xbf16>, vector<16x32xf32> -> vector<16x32xf32>
    %8 = arith.addf %6, %7 : vector<16x32xf32>
    %c0_9 = arith.constant 0 : index
    %c0_10 = arith.constant 0 : index
    %9 = vector.load %arg5[%c0_9, %c0_10] : memref<1x32xf32, #tpu.memory_space<vmem>>, vector<1x32xf32>
    %10 = vector.shape_cast %9 : vector<1x32xf32> to vector<32xf32>
    %11 = vector.shape_cast %10 : vector<32xf32> to vector<1x32xf32>
    %12 = vector.broadcast %11 : vector<1x32xf32> to vector<16x32xf32>
    %13 = arith.addf %8, %12 : vector<16x32xf32>
    %c0_11 = arith.constant 0 : index
    %c0_12 = arith.constant 0 : index
    %c0_13 = arith.constant 0 : index
    %14 = vector.load %arg9[%c0_11, %c0_12, %c0_13] : memref<1x16x32xf32, #tpu.memory_space<vmem>>, vector<1x16x32xf32>
    %15 = vector.shape_cast %14 : vector<1x16x32xf32> to vector<16x32xf32>
    %16 = vector.shape_cast %13 : vector<16x32xf32> to vector<1x16x32xf32>
    tpu.vector_store %arg9[%c0_11, %c0_12, %c0_13], %16 {strides = array<i32>} : memref<1x16x32xf32, #tpu.memory_space<vmem>>, vector<1x16x32xf32>,
    %c0_14 = arith.constant 0 : index
    %c0_15 = arith.constant 0 : index
    %17 = vector.load %arg6[%c0_14, %c0_15] : memref<1x32xf32, #tpu.memory_space<vmem>>, vector<1x32xf32>
    %18 = vector.shape_cast %17 : vector<1x32xf32> to vector<32xf32>
    %c0_16 = arith.constant 0 : index
    %c0_17 = arith.constant 0 : index
    %19 = vector.load %arg7[%c0_16, %c0_17] : memref<1x32xf32, #tpu.memory_space<vmem>>, vector<1x32xf32>
    %20 = vector.shape_cast %19 : vector<1x32xf32> to vector<32xf32>
    %cst_18 = arith.constant dense<0.000000e+00> : vector<16xf32>
    %21 = vector.multi_reduction <add>, %13, %cst_18 [1] : vector<16x32xf32> to vector<16xf32>
    %22 = vector.shape_cast %21 : vector<16xf32> to vector<16x1xf32>
    %cst_19 = arith.constant 3.200000e+01 : f32
    %23 = vector.broadcast %cst_19 : f32 to vector<16x1xf32>
    %24 = arith.divf %22, %23 : vector<16x1xf32>
    %25 = vector.broadcast %24 : vector<16x1xf32> to vector<16x32xf32>
    %26 = arith.subf %13, %25 : vector<16x32xf32>
    %27 = arith.mulf %26, %26 : vector<16x32xf32>
    %cst_20 = arith.constant dense<0.000000e+00> : vector<16xf32>
    %28 = vector.multi_reduction <add>, %27, %cst_20 [1] : vector<16x32xf32> to vector<16xf32>
    %29 = vector.shape_cast %28 : vector<16xf32> to vector<16x1xf32>
    %cst_21 = arith.constant 3.200000e+01 : f32
    %30 = vector.broadcast %cst_21 : f32 to vector<16x1xf32>
    %31 = arith.divf %29, %30 : vector<16x1xf32>
    %32 = vector.broadcast %24 : vector<16x1xf32> to vector<16x32xf32>
    %33 = arith.subf %13, %32 : vector<16x32xf32>
    %cst_22 = arith.constant 9.99999974E-6 : f32
    %34 = vector.broadcast %cst_22 : f32 to vector<16x1xf32>
    %35 = arith.addf %31, %34 : vector<16x1xf32>
    %36 = math.rsqrt %35 : vector<16x1xf32>
    %37 = vector.broadcast %36 : vector<16x1xf32> to vector<16x32xf32>
    %38 = arith.mulf %33, %37 : vector<16x32xf32>
    %39 = vector.shape_cast %18 : vector<32xf32> to vector<1x32xf32>
    %40 = vector.broadcast %39 : vector<1x32xf32> to vector<16x32xf32>
    %41 = arith.mulf %38, %40 : vector<16x32xf32>
    %42 = vector.shape_cast %20 : vector<32xf32> to vector<1x32xf32>
    %43 = vector.broadcast %42 : vector<1x32xf32> to vector<16x32xf32>
    %44 = arith.addf %41, %43 : vector<16x32xf32>
    %45 = arith.truncf %44 : vector<16x32xf32> to vector<16x32xbf16>
    %c0_23 = arith.constant 0 : index
    %c0_24 = arith.constant 0 : index
    %46 = vector.load %arg8[%c0_23, %c0_24] : memref<32x96xbf16, #tpu.memory_space<vmem>>, vector<32x96xbf16>
    %cst_25 = arith.constant dense<0.000000e+00> : vector<16x96xf32>
    %47 = tpu.matmul %45, %46, %cst_25 {dimension_numbers = #tpu.dot_dimension_numbers<[1], [0], [0], [1], [0, 0, 1, 1], [], []>} : vector<16x32xbf16>, vector<32x96xbf16>, vector<16x96xf32> -> vector<16x96xf32>
    %48 = vector.extract_strided_slice %47 {offsets = [0, 0], sizes = [16, 8], strides = [1, 1]} : vector<16x96xf32> to vector<16x8xf32>
    %cst_26 = arith.constant 0.353553385 : f32
    %49 = vector.broadcast %cst_26 : f32 to vector<16x8xf32>
    %50 = arith.mulf %48, %49 : vector<16x8xf32>
    %51 = arith.truncf %50 : vector<16x8xf32> to vector<16x8xbf16>
    %c0_27 = arith.constant 0 : index
    %c0_28 = arith.constant 0 : index
    %c0_29 = arith.constant 0 : index
    %c0_30 = arith.constant 0 : index
    %52 = vector.load %arg10[%c0_27, %c0_28, %c0_29, %c0_30] : memref<1x4x16x8xbf16, #tpu.memory_space<vmem>>, vector<1x1x16x8xbf16>
    %53 = vector.shape_cast %52 : vector<1x1x16x8xbf16> to vector<16x8xbf16>
    %54 = vector.shape_cast %51 : vector<16x8xbf16> to vector<1x1x16x8xbf16>
    tpu.vector_store %arg10[%c0_27, %c0_28, %c0_29, %c0_30], %54 {strides = array<i32>} : memref<1x4x16x8xbf16, #tpu.memory_space<vmem>>, vector<1x1x16x8xbf16>,
    %55 = vector.extract_strided_slice %47 {offsets = [0, 32], sizes = [16, 8], strides = [1, 1]} : vector<16x96xf32> to vector<16x8xf32>
    %56 = arith.truncf %55 : vector<16x8xf32> to vector<16x8xbf16>
    %c0_31 = arith.constant 0 : index
    %c0_32 = arith.constant 0 : index
    %c0_33 = arith.constant 0 : index
    %c0_34 = arith.constant 0 : index
    %57 = vector.load %arg11[%c0_31, %c0_32, %c0_33, %c0_34] : memref<1x4x16x8xbf16, #tpu.memory_space<vmem>>, vector<1x1x16x8xbf16>
    %58 = vector.shape_cast %57 : vector<1x1x16x8xbf16> to vector<16x8xbf16>
    %59 = vector.shape_cast %56 : vector<16x8xbf16> to vector<1x1x16x8xbf16>
    tpu.vector_store %arg11[%c0_31, %c0_32, %c0_33, %c0_34], %59 {strides = array<i32>} : memref<1x4x16x8xbf16, #tpu.memory_space<vmem>>, vector<1x1x16x8xbf16>,
    %60 = vector.extract_strided_slice %47 {offsets = [0, 64], sizes = [16, 8], strides = [1, 1]} : vector<16x96xf32> to vector<16x8xf32>
    %61 = arith.truncf %60 : vector<16x8xf32> to vector<16x8xbf16>
    %c0_35 = arith.constant 0 : index
    %c0_36 = arith.constant 0 : index
    %c0_37 = arith.constant 0 : index
    %c0_38 = arith.constant 0 : index
    %62 = vector.load %arg12[%c0_35, %c0_36, %c0_37, %c0_38] : memref<1x4x16x8xbf16, #tpu.memory_space<vmem>>, vector<1x1x16x8xbf16>
    %63 = vector.shape_cast %62 : vector<1x1x16x8xbf16> to vector<16x8xbf16>
    %64 = vector.shape_cast %61 : vector<16x8xbf16> to vector<1x1x16x8xbf16>
    tpu.vector_store %arg12[%c0_35, %c0_36, %c0_37, %c0_38], %64 {strides = array<i32>} : memref<1x4x16x8xbf16, #tpu.memory_space<vmem>>, vector<1x1x16x8xbf16>,
    %65 = vector.extract_strided_slice %47 {offsets = [0, 8], sizes = [16, 8], strides = [1, 1]} : vector<16x96xf32> to vector<16x8xf32>
    %cst_39 = arith.constant 0.353553385 : f32
    %66 = vector.broadcast %cst_39 : f32 to vector<16x8xf32>
    %67 = arith.mulf %65, %66 : vector<16x8xf32>
    %68 = arith.truncf %67 : vector<16x8xf32> to vector<16x8xbf16>
    %c0_40 = arith.constant 0 : index
    %c1 = arith.constant 1 : index
    %c0_41 = arith.constant 0 : index
    %c0_42 = arith.constant 0 : index
    %69 = vector.load %arg10[%c0_40, %c1, %c0_41, %c0_42] : memref<1x4x16x8xbf16, #tpu.memory_space<vmem>>, vector<1x1x16x8xbf16>
    %70 = vector.shape_cast %69 : vector<1x1x16x8xbf16> to vector<16x8xbf16>
    %71 = vector.shape_cast %68 : vector<16x8xbf16> to vector<1x1x16x8xbf16>
    tpu.vector_store %arg10[%c0_40, %c1, %c0_41, %c0_42], %71 {strides = array<i32>} : memref<1x4x16x8xbf16, #tpu.memory_space<vmem>>, vector<1x1x16x8xbf16>,
    %72 = vector.extract_strided_slice %47 {offsets = [0, 40], sizes = [16, 8], strides = [1, 1]} : vector<16x96xf32> to vector<16x8xf32>
    %73 = arith.truncf %72 : vector<16x8xf32> to vector<16x8xbf16>
    %c0_43 = arith.constant 0 : index
    %c1_44 = arith.constant 1 : index
    %c0_45 = arith.constant 0 : index
    %c0_46 = arith.constant 0 : index
    %74 = vector.load %arg11[%c0_43, %c1_44, %c0_45, %c0_46] : memref<1x4x16x8xbf16, #tpu.memory_space<vmem>>, vector<1x1x16x8xbf16>
    %75 = vector.shape_cast %74 : vector<1x1x16x8xbf16> to vector<16x8xbf16>
    %76 = vector.shape_cast %73 : vector<16x8xbf16> to vector<1x1x16x8xbf16>
    tpu.vector_store %arg11[%c0_43, %c1_44, %c0_45, %c0_46], %76 {strides = array<i32>} : memref<1x4x16x8xbf16, #tpu.memory_space<vmem>>, vector<1x1x16x8xbf16>,
    %77 = vector.extract_strided_slice %47 {offsets = [0, 72], sizes = [16, 8], strides = [1, 1]} : vector<16x96xf32> to vector<16x8xf32>
    %78 = arith.truncf %77 : vector<16x8xf32> to vector<16x8xbf16>
    %c0_47 = arith.constant 0 : index
    %c1_48 = arith.constant 1 : index
    %c0_49 = arith.constant 0 : index
    %c0_50 = arith.constant 0 : index
    %79 = vector.load %arg12[%c0_47, %c1_48, %c0_49, %c0_50] : memref<1x4x16x8xbf16, #tpu.memory_space<vmem>>, vector<1x1x16x8xbf16>
    %80 = vector.shape_cast %79 : vector<1x1x16x8xbf16> to vector<16x8xbf16>
    %81 = vector.shape_cast %78 : vector<16x8xbf16> to vector<1x1x16x8xbf16>
    tpu.vector_store %arg12[%c0_47, %c1_48, %c0_49, %c0_50], %81 {strides = array<i32>} : memref<1x4x16x8xbf16, #tpu.memory_space<vmem>>, vector<1x1x16x8xbf16>,
    %82 = vector.extract_strided_slice %47 {offsets = [0, 16], sizes = [16, 8], strides = [1, 1]} : vector<16x96xf32> to vector<16x8xf32>
    %cst_51 = arith.constant 0.353553385 : f32
    %83 = vector.broadcast %cst_51 : f32 to vector<16x8xf32>
    %84 = arith.mulf %82, %83 : vector<16x8xf32>
    %85 = arith.truncf %84 : vector<16x8xf32> to vector<16x8xbf16>
    %c0_52 = arith.constant 0 : index
    %c2 = arith.constant 2 : index
    %c0_53 = arith.constant 0 : index
    %c0_54 = arith.constant 0 : index
    %86 = vector.load %arg10[%c0_52, %c2, %c0_53, %c0_54] : memref<1x4x16x8xbf16, #tpu.memory_space<vmem>>, vector<1x1x16x8xbf16>
    %87 = vector.shape_cast %86 : vector<1x1x16x8xbf16> to vector<16x8xbf16>
    %88 = vector.shape_cast %85 : vector<16x8xbf16> to vector<1x1x16x8xbf16>
    tpu.vector_store %arg10[%c0_52, %c2, %c0_53, %c0_54], %88 {strides = array<i32>} : memref<1x4x16x8xbf16, #tpu.memory_space<vmem>>, vector<1x1x16x8xbf16>,
    %89 = vector.extract_strided_slice %47 {offsets = [0, 48], sizes = [16, 8], strides = [1, 1]} : vector<16x96xf32> to vector<16x8xf32>
    %90 = arith.truncf %89 : vector<16x8xf32> to vector<16x8xbf16>
    %c0_55 = arith.constant 0 : index
    %c2_56 = arith.constant 2 : index
    %c0_57 = arith.constant 0 : index
    %c0_58 = arith.constant 0 : index
    %91 = vector.load %arg11[%c0_55, %c2_56, %c0_57, %c0_58] : memref<1x4x16x8xbf16, #tpu.memory_space<vmem>>, vector<1x1x16x8xbf16>
    %92 = vector.shape_cast %91 : vector<1x1x16x8xbf16> to vector<16x8xbf16>
    %93 = vector.shape_cast %90 : vector<16x8xbf16> to vector<1x1x16x8xbf16>
    tpu.vector_store %arg11[%c0_55, %c2_56, %c0_57, %c0_58], %93 {strides = array<i32>} : memref<1x4x16x8xbf16, #tpu.memory_space<vmem>>, vector<1x1x16x8xbf16>,
    %94 = vector.extract_strided_slice %47 {offsets = [0, 80], sizes = [16, 8], strides = [1, 1]} : vector<16x96xf32> to vector<16x8xf32>
    %95 = arith.truncf %94 : vector<16x8xf32> to vector<16x8xbf16>
    %c0_59 = arith.constant 0 : index
    %c2_60 = arith.constant 2 : index
    %c0_61 = arith.constant 0 : index
    %c0_62 = arith.constant 0 : index
    %96 = vector.load %arg12[%c0_59, %c2_60, %c0_61, %c0_62] : memref<1x4x16x8xbf16, #tpu.memory_space<vmem>>, vector<1x1x16x8xbf16>
    %97 = vector.shape_cast %96 : vector<1x1x16x8xbf16> to vector<16x8xbf16>
    %98 = vector.shape_cast %95 : vector<16x8xbf16> to vector<1x1x16x8xbf16>
    tpu.vector_store %arg12[%c0_59, %c2_60, %c0_61, %c0_62], %98 {strides = array<i32>} : memref<1x4x16x8xbf16, #tpu.memory_space<vmem>>, vector<1x1x16x8xbf16>,
    %99 = vector.extract_strided_slice %47 {offsets = [0, 24], sizes = [16, 8], strides = [1, 1]} : vector<16x96xf32> to vector<16x8xf32>
    %cst_63 = arith.constant 0.353553385 : f32
    %100 = vector.broadcast %cst_63 : f32 to vector<16x8xf32>
    %101 = arith.mulf %99, %100 : vector<16x8xf32>
    %102 = arith.truncf %101 : vector<16x8xf32> to vector<16x8xbf16>
    %c0_64 = arith.constant 0 : index
    %c3 = arith.constant 3 : index
    %c0_65 = arith.constant 0 : index
    %c0_66 = arith.constant 0 : index
    %103 = vector.load %arg10[%c0_64, %c3, %c0_65, %c0_66] : memref<1x4x16x8xbf16, #tpu.memory_space<vmem>>, vector<1x1x16x8xbf16>
    %104 = vector.shape_cast %103 : vector<1x1x16x8xbf16> to vector<16x8xbf16>
    %105 = vector.shape_cast %102 : vector<16x8xbf16> to vector<1x1x16x8xbf16>
    tpu.vector_store %arg10[%c0_64, %c3, %c0_65, %c0_66], %105 {strides = array<i32>} : memref<1x4x16x8xbf16, #tpu.memory_space<vmem>>, vector<1x1x16x8xbf16>,
    %106 = vector.extract_strided_slice %47 {offsets = [0, 56], sizes = [16, 8], strides = [1, 1]} : vector<16x96xf32> to vector<16x8xf32>
    %107 = arith.truncf %106 : vector<16x8xf32> to vector<16x8xbf16>
    %c0_67 = arith.constant 0 : index
    %c3_68 = arith.constant 3 : index
    %c0_69 = arith.constant 0 : index
    %c0_70 = arith.constant 0 : index
    %108 = vector.load %arg11[%c0_67, %c3_68, %c0_69, %c0_70] : memref<1x4x16x8xbf16, #tpu.memory_space<vmem>>, vector<1x1x16x8xbf16>
    %109 = vector.shape_cast %108 : vector<1x1x16x8xbf16> to vector<16x8xbf16>
    %110 = vector.shape_cast %107 : vector<16x8xbf16> to vector<1x1x16x8xbf16>
    tpu.vector_store %arg11[%c0_67, %c3_68, %c0_69, %c0_70], %110 {strides = array<i32>} : memref<1x4x16x8xbf16, #tpu.memory_space<vmem>>, vector<1x1x16x8xbf16>,
    %111 = vector.extract_strided_slice %47 {offsets = [0, 88], sizes = [16, 8], strides = [1, 1]} : vector<16x96xf32> to vector<16x8xf32>
    %112 = arith.truncf %111 : vector<16x8xf32> to vector<16x8xbf16>
    %c0_71 = arith.constant 0 : index
    %c3_72 = arith.constant 3 : index
    %c0_73 = arith.constant 0 : index
    %c0_74 = arith.constant 0 : index
    %113 = vector.load %arg12[%c0_71, %c3_72, %c0_73, %c0_74] : memref<1x4x16x8xbf16, #tpu.memory_space<vmem>>, vector<1x1x16x8xbf16>
    %114 = vector.shape_cast %113 : vector<1x1x16x8xbf16> to vector<16x8xbf16>
    %115 = vector.shape_cast %112 : vector<16x8xbf16> to vector<1x1x16x8xbf16>
    tpu.vector_store %arg12[%c0_71, %c3_72, %c0_73, %c0_74], %115 {strides = array<i32>} : memref<1x4x16x8xbf16, #tpu.memory_space<vmem>>, vector<1x1x16x8xbf16>,
    return
  }
  func.func @transform_0(%arg0: i32, %arg1: i32) -> (i32, i32, i32) {
    %c0_i32 = arith.constant 0 : i32
    %c0_i32_0 = arith.constant 0 : i32
    return %arg0, %arg1, %c0_i32 : i32, i32, i32
  }
  func.func @transform_1(%arg0: i32, %arg1: i32) -> (i32, i32, i32) {
    %c0_i32 = arith.constant 0 : i32
    %c0_i32_0 = arith.constant 0 : i32
    return %arg0, %arg1, %c0_i32 : i32, i32, i32
  }
  func.func @transform_2(%arg0: i32, %arg1: i32) -> (i32, i32) {
    %c0_i32 = arith.constant 0 : i32
    %c0_i32_0 = arith.constant 0 : i32
    %c0_i32_1 = arith.constant 0 : i32
    return %c0_i32, %c0_i32_0 : i32, i32
  }
  func.func @transform_3(%arg0: i32, %arg1: i32) -> (i32, i32) {
    %c0_i32 = arith.constant 0 : i32
    %c0_i32_0 = arith.constant 0 : i32
    %c0_i32_1 = arith.constant 0 : i32
    return %c0_i32, %c0_i32_0 : i32, i32
  }
  func.func @transform_4(%arg0: i32, %arg1: i32) -> (i32, i32) {
    %c0_i32 = arith.constant 0 : i32
    %c0_i32_0 = arith.constant 0 : i32
    %c0_i32_1 = arith.constant 0 : i32
    return %c0_i32, %c0_i32_0 : i32, i32
  }
  func.func @transform_5(%arg0: i32, %arg1: i32) -> (i32, i32) {
    %c0_i32 = arith.constant 0 : i32
    %c0_i32_0 = arith.constant 0 : i32
    %c0_i32_1 = arith.constant 0 : i32
    return %c0_i32, %c0_i32_0 : i32, i32
  }
  func.func @transform_6(%arg0: i32, %arg1: i32) -> (i32, i32) {
    %c0_i32 = arith.constant 0 : i32
    %c0_i32_0 = arith.constant 0 : i32
    %c0_i32_1 = arith.constant 0 : i32
    return %c0_i32, %c0_i32_0 : i32, i32
  }
  func.func @transform_7(%arg0: i32, %arg1: i32) -> (i32, i32, i32) {
    %c0_i32 = arith.constant 0 : i32
    %c0_i32_0 = arith.constant 0 : i32
    return %arg0, %arg1, %c0_i32 : i32, i32, i32
  }
  func.func @transform_8(%arg0: i32, %arg1: i32) -> (i32, i32, i32, i32) {
    %c0_i32 = arith.constant 0 : i32
    %c0_i32_0 = arith.constant 0 : i32
    %c0_i32_1 = arith.constant 0 : i32
    return %arg0, %c0_i32, %arg1, %c0_i32_0 : i32, i32, i32, i32
  }
  func.func @transform_9(%arg0: i32, %arg1: i32) -> (i32, i32, i32, i32) {
    %c0_i32 = arith.constant 0 : i32
    %c0_i32_0 = arith.constant 0 : i32
    %c0_i32_1 = arith.constant 0 : i32
    return %arg0, %c0_i32, %arg1, %c0_i32_0 : i32, i32, i32, i32
  }
  func.func @transform_10(%arg0: i32, %arg1: i32) -> (i32, i32, i32, i32) {
    %c0_i32 = arith.constant 0 : i32
    %c0_i32_0 = arith.constant 0 : i32
    %c0_i32_1 = arith.constant 0 : i32
    return %arg0, %c0_i32, %arg1, %c0_i32_0 : i32, i32, i32, i32
  }
}

</mosaic_0001>

<bundles_post_ra>
// kernel: tpu_custom_call.1
= control target key start
LH: loop header
LB: loop body
LE: loop exit
PB: predicated region body
PF: predicated region fallthrough
CT: control target
= control target key end

     0   :  { %s1718_s0 = inlined_call_operand.vmem [shape: bf16[2,16,32], index: 0, kind: input, shape index: {}]   ;;  %s1719_s1 = inlined_call_operand.vmem [shape: bf16[2,16,32], index: 1, kind: input, shape index: {}]   ;;  %s1720_s2 = inlined_call_operand.vmem [shape: bf16[64,32], index: 2, kind: input, shape index: {}]   ;;  %s1721_s3 = inlined_call_operand.vmem [shape: f32[1,32], index: 3, kind: input, shape index: {}]   ;;  %s1722_s4 = inlined_call_operand.vmem [shape: f32[1,32], index: 4, kind: input, shape index: {}]   ;;  %s1723_s5 = inlined_call_operand.vmem [shape: f32[1,32], index: 5, kind: input, shape index: {}]   ;;  %s1724_s6 = inlined_call_operand.vmem [shape: bf16[32,96], index: 6, kind: input, shape index: {}]   ;;  %s1725_s7 = inlined_call_operand.hbm [shape: f32[2,16,32], index: 7, kind: output, shape index: {0}]   ;;  %s1726_s8 = inlined_call_operand.vmem [shape: bf16[2,4,16,8], index: 8, kind: output, shape index: {1}]   ;;  %s1727_s9 = inlined_call_operand.vmem [shape: bf16[2,4,16,8], index: 9, kind: output, shape index: {2}]   ;;  %s1728_s10 = inlined_call_operand.vmem [shape: bf16[2,4,16,8], index: 10, kind: output, shape index: {3}]  }
   0x1   :  { %1731 = sst [smem:[#allocation5_spill]] %s1718_s0 }
   0x2   :  { %1732 = sst [smem:[#allocation6_spill]] %s1719_s1 }
   0x3   :  { %1733 = sst [smem:[#allocation7_spill]] %s1720_s2 }
   0x4   :  { %1734 = sst [smem:[#allocation8_spill]] %s1721_s3 }
   0x5   :  { %16 = vsyncpa [#allocation3], 0 }
   0x6   :  { %18 = vsyncpa [#allocation3 + $0x1], 0  ;;  %s1458_s13 = smov 0   ;;  %s1460_s14 = smov 0  }
   0x7   :  { %s1462_s15 = smov 0   ;;  %s1464_s16 = smov 0  }
   0x8   :  { %s1466_s17 = smov 0   ;;  %s1468_s18 = smov 0  }
   0x9 LB: > { %s1127_s19 = sadd.s32 4294967295, %s1385_s18   ;;  %s1128_s20 = sadd.s32 4294967294, %s1385_s18   ;;  %s1385_s18 = sphi %s1468_s18, %s24_s18   ;;  %s1381_s17 = sphi %s1466_s17, %s1747_s17   ;;  %s1377_s16 = sphi %s1464_s16, %s1746_s16   ;;  %s1373_s15 = sphi %s1462_s15, %s1745_s15   ;;  %s1369_s14 = sphi %s1460_s14, %s1744_s14   ;;  %s1365_s13 = sphi %s1458_s13, %s1743_s13  }
   0xa   : > { %s36_s21 = sadd.s32 1, %s1381_s17  ;;  %s206_s22 = sadd.s32 1, %s1373_s15 }
   0xb   : > { %p38_p0 = scmp.ge.s32.totalorder %s36_s21, 2  ;;  %p216_p1 = scmp.ne.s32.totalorder %s1373_s15, %s1369_s14 }
   0xc   : > { %p217_p2 = scmp.eq.s32.totalorder %s1127_s19, 1  ;;  %p222_p3 = scmp.ne.s32.totalorder %s1369_s14, %s1365_s13 }
   0xd   : > { %s1749_s21 = smov (%p38_p0, %s36_s21), 0  ;;  %p223_p5 = scmp.eq.s32.totalorder %s1128_s20, 1 }
   0xe   : > { %p1498_p4 = por %p217_p2, %p216_p1  ;;  %s201_s24 = ssub.s32 %s1381_s17, %s1749_s21 }
   0xf   : > { %p1131_p6 = scmp.ge.s32.totalorder %s1385_s18, 1  ;;  %p204_p7 = scmp.eq.s32.totalorder %s201_s24, 0 }
  0x10   : > { %p1505_p8 = por %p223_p5, %p222_p3  ;;  %p366_p9 = scmp.lt.s32.totalorder %s1385_s18, 3 }
  0x11   : > { %s1511_s26 = scalar_select %p204_p7, %s1373_s15, %s206_s22  }
  0x12   : > { %p367_p10 = pnand %p1131_p6, %p366_p9 }
  0x13   : > { %s1737_s2 = sld [smem:[#allocation7_spill]] (!%p367_p10)  ;;  %p445_p11 = scmp.lt.s32.totalorder (!%p367_p10), %s1377_s16, 1 }
  0x14   : > { %370 = sbr.rel (%p367_p10) target bundleno = 909 (0x38d), region = 48  ;;  %s1738_s1 = sld [smem:[#allocation6_spill]] (!%p367_p10) }
  0x15   : > { %s1739_s0 = sld [smem:[#allocation5_spill]] (!%p367_p10)  ;;  %s1729_s19 = sand.u32 (!%p367_p10), 1, %s1369_s14  }
  0x16   : > { %s1132_s20 = sshll.u32 (!%p367_p10), %s1729_s19, 4  ;;  %s1740_s3 = sld [smem:[#allocation8_spill]] (!%p367_p10) }
  0x17   : > { %s1389_s27 = smov (!%p367_p10), 64   ;;  %s1391_s28 = smov (!%p367_p10), 88  }
  0x18   : > { %s1393_s11 = smov (!%p367_p10), 80   ;;  %s1395_s19 = smov (!%p367_p10), 72  }
  0x19   : > { %v1297_v0 = vld [vmem:[%s1737_s2 + $0x18] sm:$0xff]   ;;  %v1387_v1 = vmov 0.0   ;;  %v1298_v2 = vld [vmem:[%s1737_s2 + $0x8] sm:$0xff]   ;;  %v1299_v3 = vld [vmem:[%s1737_s2 + $0x10] sm:$0xff]   ;;  %vm1388_vm0 = vmmov 0   ;;  %s1535_s22 = scalar_select %p445_p11, %s1377_s16, 1 }
  0x1a   : > { %1203 = vmatprep.subr.bf16.mxu0 %v1387_v1  ;;  %1211 = vmatprep.subr.bf16.mxu1 %v1387_v1  ;;  %v1300_v4 = vld [vmem:[%s1737_s2] sm:$0xff]   ;;  %vm525_vm1 = vcmask 261120   ;;  %v1303_v32 = vld [vmem:[%s1724_s6 + $0x8] sm:$0xff]   ;;  %vm758_vm2 = vcmask 60416   ;;  %s1399_s2 = smov [#allocation2]  }
  0x1b   : > { %1204 = vmatpush3.bf16.msra.mxu0 %v1297_v0  ;;  %1207 = vmatprep.mubr.msk.bf16.mxu0 %vm1388_vm0, %v1387_v1  ;;  %s1184_s24 = sshll.u32 %s1535_s22, 3  ;;  %v1304_v33 = vld [vmem:[%s1724_s6] sm:$0xff]   ;;  %s1580_s30 = sshll.u32 %s1535_s22, 5 }
  0x1c   : > { %1212 = vmatpush3.bf16.msra.mxu1 %v1298_v2  ;;  %1205 = vmatprep.subr.bf16.mxu0 %v1387_v1  ;;  %s462_s29 = scalar_lea.vmem %s1738_s1, %s1184_s24  ;;  %s452_s12 = scalar_lea.vmem %s1739_s0, %s1184_s24  ;;  %v1151_v9 = vld [vmem:[%s1740_s3] ss:$0 sm:$0xff] }
  0x1d   : > { %1213 = vmatprep.subr.bf16.mxu1 %v1387_v1  ;;  %1215 = vmatprep.mubr.msk.bf16.mxu1 %vm1388_vm0, %v1387_v1  ;;  %v1301_v5 = vld [vmem:[%s462_s29] sm:$0xff]   ;;  %s1555_s24 = scalar_lea.vmem [#allocation2], %s1132_s20  ;;  %s1588_s20 = scalar_lea.vmem %s1726_s8, %s1580_s30 }
  0x1e   : > { %v1302_v6 = vld [vmem:[%s452_s12] sm:$0xff]   ;;  %s1390_s22 = smov 96   ;;  %s1392_s29 = smov 56  }
  0x1f   : > { %1206 = vmatpush3.bf16.msra.mxu0 %v1299_v3  ;;  %v1152_v42 = vld [vmem:[%s1722_s4] ss:$0 sm:$0xff]  ;;  %s1394_s12 = smov 48   ;;  %s907_s0 = sshll.u32 %s1555_s24, 4  ;;  %s1609_s0 = int_to_ptr.vmem [resolvable:$true] %s907_s0 }
  0x20   : > { %1214 = vmatpush3.bf16.msra.mxu1 %v1300_v4  ;;  %1219 = vmatprep.subr.bf16.mxu0 %v1387_v1  ;;  %v1153_v46 = vld [vmem:[%s1723_s5] ss:$0 sm:$0xff]  ;;  %s1193_s1 = sshll.u32 %s1377_s16, 8 }
  0x21   : > { %s1607_s3 = scalar_lea.hbm %s1725_s7, %s1193_s1  ;;  %s1313_s1 = sshll.u32 %s1399_s2, 4  ;;  %s1314_s1 = int_to_ptr.vmem [resolvable:$false] %s1313_s1 }
  0x22   : > { %1208 = vmatmul.mubr.msk.bf16.vlgmr.msra.gmra.mxu0 %vm525_vm1, %v1301_v5  ;;  %s1315_s16 = scalar_lea.vmem %s1314_s1, 512  ;;  %p1316_p1 = scmp.lt.s32.totalorder %s1609_s0, %s1314_s1 }
  0x23   : > { %1223 = vmatprep.mubr.msk.bf16.mxu0 %vm1388_vm0, %v1387_v1  ;;  %1216 = vmatmul.mubr.msk.bf16.vlgmr.msra.gmra.mxu1 %vm525_vm1, %v1302_v6 }
  0x24   : > { %1220 = vmatpush3.bf16.msra.mxu0 %v1303_v32 }
  0x25   : > { %1221 = vmatprep.subr.bf16.mxu0 %v1387_v1 }
  0x28   : > { %1222 = vmatpush3.bf16.msra.mxu0 %v1304_v33 }
  0xe2   : > { %v563_v7 = vpop.f32.mrf.mxu0 }
  0xe3   : > { %v624_v8 = vpop.f32.mrf.mxu1 }
  0xe4   : > { %v1209_v10 = vpop.f32.mrf.mxu0  ;;  %v625_v11 = vadd.f32 %v624_v8, %v563_v7 }
  0xe5   : > { %v1217_v12 = vpop.f32.mrf.mxu1 }
  0xe6   : > { %v566_v13 = vpop.f32.mrf.mxu0  ;;  %v638_v14 = vadd.f32 %v1151_v9, %v625_v11 }
  0xe7   : > { %v627_v15 = vpop.f32.mrf.mxu1 }
  0xe8   : > { %v1210_v16 = vpop.f32.mrf.mxu0  ;;  %640 = vst.msk [vmem:[%s1555_s24] sm:$0xff] %vm525_vm1, %v638_v14  ;;  %v628_v17 = vadd.f32 %v627_v15, %v566_v13  ;;  %v644_v18 = vsel %vm525_vm1, %v638_v14, 0.0 }
  0xe9   : > { %645 = vadd.xlane.f32.xlu0 %v644_v18  ;;  %v1218_v19 = vpop.f32.mrf.mxu1 }
  0xea   : > { %v639_v20 = vadd.f32 %v1151_v9, %v628_v17 }
  0xec   : > { %641 = vst.msk [vmem:[%s1555_s24 + $0x8] sm:$0xff] %vm525_vm1, %v639_v20  ;;  %v647_v21 = vsel %vm525_vm1, %v639_v20, 0.0  ;;  %s1741_s24 = sand.u32 1, %s1369_s14  }
  0xed   : > { %648 = vadd.xlane.f32.xlu0 %v647_v21 }
 0x172   : > { %v646_v22 = vpop.xlane.xlu0 %645 }
 0x173   : > { %v651_v23 = vmul.f32 0.03125, %v646_v22 }
 0x175   : > { %v653_v24 = vsub.f32 %v638_v14, %v651_v23 }
 0x176   : > { %v649_v25 = vpop.xlane.xlu0 %648 }
 0x177   : > { %v652_v26 = vmul.f32 0.03125, %v649_v25  ;;  %v655_v27 = vmul.f32 %v653_v24, %v653_v24 }
 0x179   : > { %v654_v28 = vsub.f32 %v639_v20, %v652_v26  ;;  %v657_v29 = vsel %vm525_vm1, %v655_v27, 0.0 }
 0x17a   : > { %658 = vadd.xlane.f32.xlu1 %v657_v29 }
 0x17b   : > { %v656_v30 = vmul.f32 %v654_v28, %v654_v28 }
 0x17d   : > { %v660_v31 = vsel %vm525_vm1, %v656_v30, 0.0 }
 0x17e   : > { %661 = vadd.xlane.f32.xlu1 %v660_v31 }
 0x203   : > { %v659_v34 = vpop.xlane.xlu1 %658 }
 0x204   : > { %v663_v35 = vmul.f32 0.03125, %v659_v34 }
 0x206   : > { %v665_v36 = vadd.f32 1e-05, %v663_v35 }
 0x207   : > { %v662_v37 = vpop.xlane.xlu1 %661 }
 0x208   : > { %1305 = vrsqrt.f32 %v665_v36  ;;  %v664_v38 = vmul.f32 0.03125, %v662_v37 }
 0x20a   : > { %v666_v39 = vadd.f32 1e-05, %v664_v38 }
 0x20c   : > { %1307 = vrsqrt.f32 %v666_v39 }
 0x215   : > { %v1306_v40 = vpop.eup %1305 }
 0x216   : > { %v669_v41 = vmul.f32 %v1306_v40, %v653_v24 }
 0x218   : > { %v677_v45 = vmul.f32 %v1152_v42, %v669_v41 }
 0x219   : > { %v1308_v43 = vpop.eup %1307 }
 0x21a   : > { %v670_v44 = vmul.f32 %v1308_v43, %v654_v28  ;;  %v685_v48 = vadd.f32 %v1153_v46, %v677_v45 }
 0x21c   : > { %v678_v47 = vmul.f32 %v1152_v42, %v670_v44 }
 0x21e   : > { %v686_v49 = vadd.f32 %v1153_v46, %v678_v47 }
 0x220   : > { %v687_v50 = vpack.c.bf16 %v686_v49, %v685_v48 }
 0x222   : > { %1224 = vmatmul.mubr.msk.bf16.vlgmr.msra.gmra.mxu0 %vm525_vm1, %v687_v50 }
 0x2e2   : > { %v741_v51 = vpop.f32.mrf.mxu0 }
 0x2e3   : > { %v748_v52 = vmul.f32 0.35355338, %v741_v51  ;;  %v1582_v53 = vpack.c.bf16 %v741_v51, %v741_v51 }
 0x2e4   : > { %v1225_v54 = vpop.f32.mrf.mxu0 }
 0x2e5   : > { %v1189_v55 = vpack.c.bf16 %v748_v52, %v748_v52  ;;  %775 = vrot.lane.b32.xlu1 %v1582_v53, %s1389_s27  ;;  %767 = vrot.lane.b32.xlu0 %v1582_v53, %s1390_s22 }
 0x2e6   : > { %v744_v56 = vpop.f32.mrf.mxu0 }
 0x2e7   : > { %759 = vst.msk [vmem:[%s1588_s20] sm:$0xf] %vm758_vm2, %v1189_v55  ;;  %v749_v57 = vmul.f32 0.35355338, %v744_v56  ;;  %v1192_v58 = vpack.c.bf16 %v744_v56, %v744_v56 }
 0x2e8   : > { %v1226_v59 = vpop.f32.mrf.mxu0 }
 0x2e9   : > { %v1190_v60 = vpack.c.bf16 %v749_v57, %v749_v57  ;;  %792 = vrot.lane.b32.xlu0 %v1582_v53, %s1391_s28  ;;  %769 = vrot.lane.b32.xlu1 %v1192_v58, %s1390_s22  ;;  %s1396_s22 = smov 120  }
 0x2eb   : > { %760 = vst.msk [vmem:[%s1588_s20 + $0x4] sm:$0xf] %vm758_vm2, %v1190_v60 }
 0x2ed   : > { %801 = vrot.lane.b32.xlu0 %v1582_v53, %s1392_s29  ;;  %777 = vrot.lane.b32.xlu1 %v1192_v58, %s1389_s27  ;;  %s1397_s27 = smov 112  }
 0x2f1   : > { %819 = vrot.lane.b32.xlu0 %v1582_v53, %s1393_s11  ;;  %794 = vrot.lane.b32.xlu1 %v1192_v58, %s1391_s28 }
 0x2f5   : > { %828 = vrot.lane.b32.xlu0 %v1582_v53, %s1394_s12  ;;  %803 = vrot.lane.b32.xlu1 %v1192_v58, %s1392_s29  ;;  %s1730_s29 = smov 104  }
 0x2f9   : > { %846 = vrot.lane.b32.xlu0 %v1582_v53, %s1395_s19  ;;  %821 = vrot.lane.b32.xlu1 %v1192_v58, %s1393_s11  ;;  %s1614_s11 = scalar_lea.sflag [#allocation3], %s1741_s24 }
 0x2fd   : > { %783 = vrot.lane.b32.xlu0 %v1189_v55, %s1396_s22  ;;  %830 = vrot.lane.b32.xlu1 %v1192_v58, %s1394_s12  ;;  %s1309_s12 = scalar_lea.vmem %s1609_s0, 256 }
 0x2fe   : > { %p1310_p12 = scmp.ne.s32.totalorder %s1609_s0, %s1309_s12  ;;  %p1317_p2 = scmp.lt.s32.totalorder %s1315_s16, %s1309_s12 }
 0x300   : > { %p1311_p13 = pnand %p1310_p12, %p1498_p4  ;;  %p1318_p3 = por %p1317_p2, %p1316_p1 }
 0x301   : > { %810 = vrot.lane.b32.xlu0 %v1189_v55, %s1397_s27  ;;  %848 = vrot.lane.b32.xlu1 %v1192_v58, %s1395_s19 }
 0x302   : > { %p1312_p0 = pneg %p1311_p13 }
 0x304   : > { %p1319_p5 = pnand %p1318_p3, %p1312_p0 }
 0x305   : > { %837 = vrot.lane.b32.xlu0 %v1189_v55, %s1730_s29  ;;  %785 = vrot.lane.b32.xlu1 %v1190_v60, %s1396_s22 }
 0x306   : > { %1322 = shalt.err (!%p1319_p5)
}
 0x307   : > { %s1323_s19 = scalar_lea.hbm %s1607_s3, 256  ;;  %s1327_s24 = scalar_lea.hbm %s1725_s7, 512 }
 0x308   : > { %p1324_p6 = scmp.ne.s32.totalorder %s1607_s3, %s1323_s19  ;;  %p1328_p10 = scmp.lt.s32.totalorder %s1607_s3, %s1725_s7 }
 0x309   : > { %p1329_p11 = scmp.lt.s32.totalorder %s1327_s24, %s1323_s19 }
 0x30a   : > { %p1325_p7 = pnand %p1324_p6, %p1498_p4 }
 0x30b   : > { %p1330_p12 = por %p1329_p11, %p1328_p10 }
 0x30c   : > { %p1326_p9 = pneg %p1325_p7 }
 0x30e   : > { %p1331_p13 = pnand %p1330_p12, %p1326_p9 }
 0x310   : > { %1334 = shalt.err (!%p1331_p13)
}
 0x311   : > { %s1400_s12 = smov 128   ;;  %s1401_s1 = smov 8   ;;  %812 = vrot.lane.b32.xlu1 %v1190_v60, %s1397_s27 }
 0x312   : > { %1227 = dma.vmem_to_hbm [thread:$0]  (%p1498_p4), %s1609_s0, 256, %s1607_s3, %s1614_s11, %s1400_s12, %s1400_s12, %s1401_s1  }
 0x313   : > { %s1402_s16 = smov 40   ;;  %s1742_s29 = smov 104  }
 0x314   : > { %855 = vrot.lane.b32.xlu0 %v1582_v53, %s1402_s16  ;;  %s1644_s28 = scalar_lea.vmem %s1727_s9, %s1580_s30  ;;  %s1650_s0 = scalar_lea.vmem %s1728_s10, %s1580_s30 }
 0x315   : > { %839 = vrot.lane.b32.xlu1 %v1190_v60, %s1742_s29 }
 0x319   : > { %857 = vrot.lane.b32.xlu1 %v1192_v58, %s1402_s16 }
 0x357   : > { %v776_v61 = vpop.permute.xlu1 %775  ;;  %v768_v62 = vpop.permute.xlu0 %767 }
 0x358   : > { %781 = vst.msk [vmem:[%s1650_s0] sm:$0xf] %vm758_vm2, %v776_v61  ;;  %773 = vst.msk [vmem:[%s1644_s28] sm:$0xf] %vm758_vm2, %v768_v62 }
 0x35b   : > { %v793_v63 = vpop.permute.xlu0 %792  ;;  %v770_v0 = vpop.permute.xlu1 %769 }
 0x35c   : > { %1163 = vst.msk [vmem:[%s1644_s28 + $0x8] sm:$0xf] %vm758_vm2, %v793_v63  ;;  %774 = vst.msk [vmem:[%s1644_s28 + $0x4] sm:$0xf] %vm758_vm2, %v770_v0 }
 0x35f   : > { %v802_v1 = vpop.permute.xlu0 %801  ;;  %v778_v2 = vpop.permute.xlu1 %777 }
 0x360   : > { %1165 = vst.msk [vmem:[%s1650_s0 + $0x8] sm:$0xf] %vm758_vm2, %v802_v1  ;;  %782 = vst.msk [vmem:[%s1650_s0 + $0x4] sm:$0xf] %vm758_vm2, %v778_v2 }
 0x363   : > { %v820_v3 = vpop.permute.xlu0 %819  ;;  %v795_v4 = vpop.permute.xlu1 %794 }
 0x364   : > { %1169 = vst.msk [vmem:[%s1644_s28 + $0x10] sm:$0xf] %vm758_vm2, %v820_v3  ;;  %1164 = vst.msk [vmem:[%s1644_s28 + $0xc] sm:$0xf] %vm758_vm2, %v795_v4 }
 0x367   : > { %v829_v5 = vpop.permute.xlu0 %828  ;;  %v804_v6 = vpop.permute.xlu1 %803 }
 0x368   : > { %1171 = vst.msk [vmem:[%s1650_s0 + $0x10] sm:$0xf] %vm758_vm2, %v829_v5  ;;  %1166 = vst.msk [vmem:[%s1650_s0 + $0xc] sm:$0xf] %vm758_vm2, %v804_v6 }
 0x36b   : > { %v847_v7 = vpop.permute.xlu0 %846  ;;  %v822_v8 = vpop.permute.xlu1 %821 }
 0x36c   : > { %1175 = vst.msk [vmem:[%s1644_s28 + $0x18] sm:$0xf] %vm758_vm2, %v847_v7  ;;  %1170 = vst.msk [vmem:[%s1644_s28 + $0x14] sm:$0xf] %vm758_vm2, %v822_v8 }
 0x36f   : > { %v784_v9 = vpop.permute.xlu0 %783  ;;  %v831_v10 = vpop.permute.xlu1 %830 }
 0x370   : > { %1161 = vst.msk [vmem:[%s1588_s20 + $0x8] sm:$0xf] %vm758_vm2, %v784_v9  ;;  %1172 = vst.msk [vmem:[%s1650_s0 + $0x14] sm:$0xf] %vm758_vm2, %v831_v10 }
 0x373   : > { %v811_v11 = vpop.permute.xlu0 %810  ;;  %v849_v12 = vpop.permute.xlu1 %848 }
 0x374   : > { %1167 = vst.msk [vmem:[%s1588_s20 + $0x10] sm:$0xf] %vm758_vm2, %v811_v11  ;;  %1176 = vst.msk [vmem:[%s1644_s28 + $0x1c] sm:$0xf] %vm758_vm2, %v849_v12 }
 0x377   : > { %v838_v13 = vpop.permute.xlu0 %837  ;;  %v786_v14 = vpop.permute.xlu1 %785 }
 0x378   : > { %1173 = vst.msk [vmem:[%s1588_s20 + $0x18] sm:$0xf] %vm758_vm2, %v838_v13  ;;  %1162 = vst.msk [vmem:[%s1588_s20 + $0xc] sm:$0xf] %vm758_vm2, %v786_v14 }
 0x383   : > { %v813_v16 = vpop.permute.xlu1 %812 }
 0x384   : > { %1168 = vst.msk [vmem:[%s1588_s20 + $0x14] sm:$0xf] %vm758_vm2, %v813_v16 }
 0x386   : > { %v856_v15 = vpop.permute.xlu0 %855 }
 0x387   : > { %1177 = vst.msk [vmem:[%s1650_s0 + $0x18] sm:$0xf] %vm758_vm2, %v856_v15  ;;  %v840_v17 = vpop.permute.xlu1 %839 }
 0x388   : > { %1174 = vst.msk [vmem:[%s1588_s20 + $0x1c] sm:$0xf] %vm758_vm2, %v840_v17 }
 0x38b   : > { %v858_v18 = vpop.permute.xlu1 %857 }
 0x38c   : > { %1178 = vst.msk [vmem:[%s1650_s0 + $0x1c] sm:$0xf] %vm758_vm2, %v858_v18 }
 0x38d PF: > { %p1233_p4 = scmp.ge.s32.totalorder %s1385_s18, 2  ;;  %s934_s3 = sand.u32 1, %s1365_s13  }
 0x38e   : > { %s935_s23 = scalar_lea.sflag [#allocation3], %s934_s3 }
 0x38f   : > { %p1230_p0 = pnand %p1233_p4, %p1505_p8 }
 0x391   : > { %p1231_p1 = pneg %p1230_p0 }
 0x393   : > { %1360 = dma.done.wait (%p1231_p1), %s935_s23, 256  }
 0x394   : > { %1362 = vsyncadd (%p1231_p1), %s935_s23, 4294967040  ;;  %s24_s18 = sadd.s32 1, %s1385_s18   ;;  %s1743_s13 = smov %s1369_s14 }
 0x395   : > { %p21_p2 = scmp.ge.s32.totalorder %s24_s18, 4   ;;  %s1744_s14 = smov %s1373_s15 }
 0x396   : > { %s1745_s15 = smov %s1511_s26  ;;  %s1746_s16 = smov %s1381_s17 }
 0x397   : > { %s1747_s17 = smov %s1749_s21  ;;  %23 = sbr.rel (!%p21_p2) target bundleno = 9 (0x9), region = 131 }
 0x39c   :  { %976 = vsyncpa [#allocation3], 1 }
 0x39d   :  { %978 = vsyncpa [#allocation3 + $0x1], 1 }

</bundles_post_ra>
